<compile_context>
chip_gen: v6e
topology: v6e:2x2x1
jax: 0.10.0
libtpu: 0.0.40
codegen_flags: <defaults>
</compile_context>

<pallas_src>
import jax
import jax.numpy as jnp
from jax.experimental import pallas as pl
from jax.experimental.pallas import tpu as pltpu


def _round_up(x, m):
    return (x + m - 1) // m * m


def combiner_kernel(
    img_ref, txt_ref,                 # (TB, Ep) f32 activation tiles
    wt_ref, bt_ref,                   # text_projection_layer  (Ep,P) bf16, (1,P) f32
    wi_ref, bi_ref,                   # image_projection_layer (Ep,P) bf16, (1,P) f32
    wh_t_ref, wh_i_ref, bh_ref,       # fused [combiner | dyn_scalar[0]] (P,2H) bf16 x2, (1,2H) f32
    wd2_ref, bd2_ref,                 # dynamic_scalar[3]: (1,H) f32, (1,1) f32 in SMEM
    wo_ref, bo_ref,                   # output_layer (H,Ep) bf16, (1,Ep) f32
    out_ref,                          # (TB, Ep) f32
):
    H = wo_ref.shape[0]

    img = img_ref[...]                # f32
    txt = txt_ref[...]

    # projections + ReLU (dropout1/dropout2 identity in eval).
    # bf16 MXU operands, f32 accumulation, f32 elementwise tail.
    tp = jnp.maximum(
        jnp.dot(txt.astype(jnp.bfloat16), wt_ref[...],
                preferred_element_type=jnp.float32) + bt_ref[...], 0.0)
    ip = jnp.maximum(
        jnp.dot(img.astype(jnp.bfloat16), wi_ref[...],
                preferred_element_type=jnp.float32) + bi_ref[...], 0.0)
    tp16 = tp.astype(jnp.bfloat16)
    ip16 = ip.astype(jnp.bfloat16)

    # Fused hidden stage: columns [:H] = combiner_layer, [H:] = dynamic_scalar[0].
    # cat([tp, ip], -1) @ W is expressed as two split matmuls over the concat axis.
    pre = (jnp.dot(tp16, wh_t_ref[...], preferred_element_type=jnp.float32)
           + jnp.dot(ip16, wh_i_ref[...], preferred_element_type=jnp.float32)
           + bh_ref[...])
    comb = jnp.maximum(pre[:, :H], 0.0)        # dropout3 identity in eval
    hdyn = jnp.maximum(pre[:, H:], 0.0)

    # dynamic_scalar tail: Linear(H -> 1) as a lane reduction, then sigmoid (f32).
    logit = jnp.sum(hdyn * wd2_ref[...], axis=-1, keepdims=True) + bd2_ref[0, 0]
    dyn = jax.nn.sigmoid(logit)                # (TB, 1)

    # output_layer + residual mix: dyn*txt + (1-dyn)*img == img + dyn*(txt - img).
    out = (jnp.dot(comb.astype(jnp.bfloat16), wo_ref[...],
                   preferred_element_type=jnp.float32)
           + bo_ref[...]
           + img + dyn * (txt - img))

    # F.normalize(out, dim=-1) = out / max(||out||, 1e-12) -> rsqrt form (EUP slot).
    sumsq = jnp.sum(out * out, axis=-1, keepdims=True)
    out_ref[...] = out * jax.lax.rsqrt(jnp.maximum(sumsq, 1e-24))


def combiner_forward(image_features, text_features, kp, *, block_b=256):
    """kp: kernel-ready params from prepare_kernel_params (padded / fused / bf16)."""
    B, E = image_features.shape
    Ep, P = kp["wt"].shape
    H = kp["wo"].shape[0]

    # batch tiling: pad B up to a multiple of the batch tile (tile rows % 8 == 0).
    if B <= block_b:
        tb = _round_up(max(B, 1), 8)
        b_pad = tb
    else:
        tb = block_b
        b_pad = _round_up(B, tb)

    pad2 = lambda x: jnp.pad(x.astype(jnp.float32),
                             ((0, b_pad - B), (0, Ep - E)))
    img_p = pad2(image_features)
    txt_p = pad2(text_features)

    grid = (b_pad // tb,)
    batch_map = lambda i: (i, 0)
    const_map = lambda i: (0, 0)

    in_specs = [
        pl.BlockSpec((tb, Ep), batch_map),             # image tile
        pl.BlockSpec((tb, Ep), batch_map),             # text tile
        pl.BlockSpec((Ep, P), const_map),              # wt   (VMEM-resident)
        pl.BlockSpec((1, P), const_map),               # bt
        pl.BlockSpec((Ep, P), const_map),              # wi
        pl.BlockSpec((1, P), const_map),               # bi
        pl.BlockSpec((P, 2 * H), const_map),           # fused hidden W (text half)
        pl.BlockSpec((P, 2 * H), const_map),           # fused hidden W (image half)
        pl.BlockSpec((1, 2 * H), const_map),           # fused hidden bias
        pl.BlockSpec((1, H), const_map),               # wd2 row
        pl.BlockSpec((1, 1), const_map,
                     memory_space=pltpu.MemorySpace.SMEM),  # bd2 scalar in SMEM
        pl.BlockSpec((H, Ep), const_map),              # wo
        pl.BlockSpec((1, Ep), const_map),              # bo
    ]
    out_specs = pl.BlockSpec((tb, Ep), batch_map)

    # Rough VMEM budget: resident weights + double-buffered activation tiles
    # + f32 intermediates; clamp to [32 MiB, 64 MiB] so it is valid on v7x.
    weight_bytes = (2 * Ep * P + 2 * P * 2 * H + H * Ep) * 2 \
        + (2 * P + 2 * H + H + Ep + 1) * 4
    act_bytes = 3 * 2 * tb * Ep * 4
    inter_bytes = tb * (2 * P + 2 * 2 * H + 2 * Ep) * 4
    vmem_limit = int(min(64 * 1024 * 1024,
                         max(32 * 1024 * 1024,
                             2 * (weight_bytes + act_bytes + inter_bytes))))

    flops = 2 * b_pad * (2 * Ep * P + 2 * P * 2 * H + H * Ep)
    bytes_accessed = weight_bytes + 3 * b_pad * Ep * 4
    cost = pl.CostEstimate(flops=flops, transcendentals=2 * b_pad,
                           bytes_accessed=bytes_accessed)

    out_p = pl.pallas_call(
        combiner_kernel,
        out_shape=jax.ShapeDtypeStruct((b_pad, Ep), jnp.float32),
        grid=grid,
        in_specs=in_specs,
        out_specs=out_specs,
        compiler_params=pltpu.CompilerParams(
            dimension_semantics=("parallel",),
            vmem_limit_bytes=vmem_limit),
        cost_estimate=cost,
    )(
        img_p, txt_p,
        kp["wt"], kp["bt"], kp["wi"], kp["bi"],
        kp["wh_t"], kp["wh_i"], kp["bh"],
        kp["wd2"], kp["bd2"],
        kp["wo"], kp["bo"],
    )
    return out_p[:B, :E]


def init_params(key, emb_dim, projection_dim, hidden_dim):
    """Deterministic synthetic params (PyTorch Linear init, pre-transposed to (in, out))."""
    ks = jax.random.split(key, 12)
    E, P, H = emb_dim, projection_dim, hidden_dim

    def lin(kw, kb, fan_in, fan_out):
        # PyTorch Linear stores weight as (out, in); we return the transpose (in, out).
        scale = 1.0 / jnp.sqrt(fan_in)
        w = jax.random.uniform(kw, (fan_out, fan_in), jnp.float32, -scale, scale)
        b = jax.random.uniform(kb, (fan_out,), jnp.float32, -scale, scale)
        return w.T, b.reshape(1, fan_out)

    wt, bt = lin(ks[0], ks[1], E, P)          # text_projection_layer
    wi, bi = lin(ks[2], ks[3], E, P)          # image_projection_layer
    wc, bc = lin(ks[4], ks[5], 2 * P, H)      # combiner_layer
    wd1, bd1 = lin(ks[6], ks[7], 2 * P, H)    # dynamic_scalar[0]
    wd2, bd2 = lin(ks[8], ks[9], H, 1)        # dynamic_scalar[3]
    wo, bo = lin(ks[10], ks[11], H, E)        # output_layer

    return {
        "wt": wt, "bt": bt, "wi": wi, "bi": bi,
        # split cat([text, image]) weights into the text / image halves
        "wct": wc[:P, :], "wci": wc[P:, :], "bc": bc,
        "wd1t": wd1[:P, :], "wd1i": wd1[P:, :], "bd1": bd1,
        "wd2": wd2.T,                 # (1, H) row for the lane-reduction form
        "bd2": bd2.reshape(1, 1),
        "wo": wo, "bo": bo,
    }


def prepare_kernel_params(p, emb_dim):
    """Pad E to a lane-dense multiple of 128, fuse the two P->H matmul pairs,
    and cast MXU weight operands to bf16 (f32 accumulation happens in-kernel)."""
    E = emb_dim
    Ep = _round_up(E, 128)
    pad_e = Ep - E
    return {
        "wt": jnp.pad(p["wt"], ((0, pad_e), (0, 0))).astype(jnp.bfloat16),
        "bt": p["bt"],
        "wi": jnp.pad(p["wi"], ((0, pad_e), (0, 0))).astype(jnp.bfloat16),
        "bi": p["bi"],
        "wh_t": jnp.concatenate([p["wct"], p["wd1t"]], axis=1).astype(jnp.bfloat16),
        "wh_i": jnp.concatenate([p["wci"], p["wd1i"]], axis=1).astype(jnp.bfloat16),
        "bh": jnp.concatenate([p["bc"], p["bd1"]], axis=1),
        "wd2": p["wd2"],
        "bd2": p["bd2"],
        "wo": jnp.pad(p["wo"], ((0, 0), (0, pad_e))).astype(jnp.bfloat16),
        "bo": jnp.pad(p["bo"], ((0, 0), (0, pad_e))),
    }


def reference_forward(image_features, text_features, p, *, mxu_dtype=jnp.float32):
    """Pure-JAX reference. mxu_dtype=bfloat16 mimics the kernel's mixed precision."""
    def mm(x, w):
        return jnp.dot(x.astype(mxu_dtype), w.astype(mxu_dtype),
                       preferred_element_type=jnp.float32)

    tp = jax.nn.relu(mm(text_features, p["wt"]) + p["bt"])
    ip = jax.nn.relu(mm(image_features, p["wi"]) + p["bi"])
    comb = jax.nn.relu(mm(tp, p["wct"]) + mm(ip, p["wci"]) + p["bc"])
    h = jax.nn.relu(mm(tp, p["wd1t"]) + mm(ip, p["wd1i"]) + p["bd1"])
    dyn = jax.nn.sigmoid(jnp.sum(h * p["wd2"], axis=-1, keepdims=True) + p["bd2"])
    out = (mm(comb, p["wo"]) + p["bo"]
           + dyn * text_features + (1.0 - dyn) * image_features)
    norm = jnp.sqrt(jnp.sum(out * out, axis=-1, keepdims=True))
    return out / jnp.maximum(norm, 1e-12)


if __name__ == "__main__":
    # Small shapes consistent with the module (emb_dim, 4*emb_dim, 8*emb_dim).
    B, E = 8, 32
    P, H = E * 4, E * 8     # 128, 256

    key = jax.random.PRNGKey(0)
    k_img, k_txt, k_param = jax.random.split(key, 3)
    image_features = jax.random.normal(k_img, (B, E), jnp.float32)
    text_features = jax.random.normal(k_txt, (B, E), jnp.float32)

    params = init_params(k_param, E, P, H)
    kparams = prepare_kernel_params(params, E)

    out = combiner_forward(image_features, text_features, kparams)
    out = jax.block_until_ready(out)
    assert out.shape == (B, E)

    # Reference that mirrors the kernel's bf16-MXU / f32-accumulate precision.
    ref_mixed = reference_forward(image_features, text_features, params,
                                  mxu_dtype=jnp.bfloat16)
    assert jnp.allclose(out, ref_mixed, atol=1e-3, rtol=1e-3), \
        "mismatch vs mixed-precision JAX reference"

    # Sanity check vs the pure-f32 reference (loose tolerance due to bf16 matmuls).
    ref_f32 = reference_forward(image_features, text_features, params)
    assert jnp.allclose(out, ref_f32, atol=5e-2, rtol=5e-2), \
        "mismatch vs f32 JAX reference"

    print("KERNEL_OK")
</pallas_src>

<mosaic_0001>
module attributes {stable_mosaic.version = 11 : i64} {
  func.func @combiner_kernel(%arg0: i32, %arg1: memref<8x128xf32, #tpu.memory_space<vmem>>, %arg2: memref<8x128xf32, #tpu.memory_space<vmem>>, %arg3: memref<128x128xbf16, #tpu.memory_space<vmem>>, %arg4: memref<1x128xf32, #tpu.memory_space<vmem>>, %arg5: memref<128x128xbf16, #tpu.memory_space<vmem>>, %arg6: memref<1x128xf32, #tpu.memory_space<vmem>>, %arg7: memref<128x512xbf16, #tpu.memory_space<vmem>>, %arg8: memref<128x512xbf16, #tpu.memory_space<vmem>>, %arg9: memref<1x512xf32, #tpu.memory_space<vmem>>, %arg10: memref<1x256xf32, #tpu.memory_space<vmem>>, %arg11: memref<1x1xf32, #tpu.memory_space<smem>>, %arg12: memref<256x128xbf16, #tpu.memory_space<vmem>>, %arg13: memref<1x128xf32, #tpu.memory_space<vmem>>, %arg14: memref<8x128xf32, #tpu.memory_space<vmem>>) attributes {dimension_semantics = [#tpu.dimension_semantics<parallel>], iteration_bounds = array<i64: 1>, scalar_prefetch = 0 : i64, scratch_operands = 0 : i64, tpu.core_type = #tpu.core_type<tc>, window_params = [{transform_indices = @transform_0, window_bounds = array<i64: 8, 128>}, {transform_indices = @transform_1, window_bounds = array<i64: 8, 128>}, {pipeline_mode = #tpu.pipeline_mode<synchronous>, transform_indices = @transform_2, window_bounds = array<i64: 128, 128>}, {pipeline_mode = #tpu.pipeline_mode<synchronous>, transform_indices = @transform_3, window_bounds = array<i64: 1, 128>}, {pipeline_mode = #tpu.pipeline_mode<synchronous>, transform_indices = @transform_4, window_bounds = array<i64: 128, 128>}, {pipeline_mode = #tpu.pipeline_mode<synchronous>, transform_indices = @transform_5, window_bounds = array<i64: 1, 128>}, {pipeline_mode = #tpu.pipeline_mode<synchronous>, transform_indices = @transform_6, window_bounds = array<i64: 128, 512>}, {pipeline_mode = #tpu.pipeline_mode<synchronous>, transform_indices = @transform_7, window_bounds = array<i64: 128, 512>}, {pipeline_mode = #tpu.pipeline_mode<synchronous>, transform_indices = @transform_8, window_bounds = array<i64: 1, 512>}, {pipeline_mode = #tpu.pipeline_mode<synchronous>, transform_indices = @transform_9, window_bounds = array<i64: 1, 256>}, {transform_indices = @transform_10, window_bounds = array<i64: 1, 1>}, {pipeline_mode = #tpu.pipeline_mode<synchronous>, transform_indices = @transform_11, window_bounds = array<i64: 256, 128>}, {pipeline_mode = #tpu.pipeline_mode<synchronous>, transform_indices = @transform_12, window_bounds = array<i64: 1, 128>}, {transform_indices = @transform_13, window_bounds = array<i64: 8, 128>}]} {
    %c0 = arith.constant 0 : index
    %c0_0 = arith.constant 0 : index
    %0 = vector.load %arg1[%c0, %c0_0] : memref<8x128xf32, #tpu.memory_space<vmem>>, vector<8x128xf32>
    %c0_1 = arith.constant 0 : index
    %c0_2 = arith.constant 0 : index
    %1 = vector.load %arg2[%c0_1, %c0_2] : memref<8x128xf32, #tpu.memory_space<vmem>>, vector<8x128xf32>
    %2 = arith.truncf %1 : vector<8x128xf32> to vector<8x128xbf16>
    %c0_3 = arith.constant 0 : index
    %c0_4 = arith.constant 0 : index
    %3 = vector.load %arg3[%c0_3, %c0_4] : memref<128x128xbf16, #tpu.memory_space<vmem>>, vector<128x128xbf16>
    %cst = arith.constant dense<0.000000e+00> : vector<8x128xf32>
    %4 = tpu.matmul %2, %3, %cst {dimension_numbers = #tpu.dot_dimension_numbers<[1], [0], [0], [1], [0, 0, 1, 1], [], []>} : vector<8x128xbf16>, vector<128x128xbf16>, vector<8x128xf32> -> vector<8x128xf32>
    %c0_5 = arith.constant 0 : index
    %c0_6 = arith.constant 0 : index
    %5 = vector.load %arg4[%c0_5, %c0_6] : memref<1x128xf32, #tpu.memory_space<vmem>>, vector<1x128xf32>
    %6 = vector.broadcast %5 : vector<1x128xf32> to vector<8x128xf32>
    %7 = arith.addf %4, %6 : vector<8x128xf32>
    %cst_7 = arith.constant 0.000000e+00 : f32
    %8 = vector.broadcast %cst_7 : f32 to vector<8x128xf32>
    %9 = arith.maximumf %7, %8 : vector<8x128xf32>
    %10 = arith.truncf %0 : vector<8x128xf32> to vector<8x128xbf16>
    %c0_8 = arith.constant 0 : index
    %c0_9 = arith.constant 0 : index
    %11 = vector.load %arg5[%c0_8, %c0_9] : memref<128x128xbf16, #tpu.memory_space<vmem>>, vector<128x128xbf16>
    %cst_10 = arith.constant dense<0.000000e+00> : vector<8x128xf32>
    %12 = tpu.matmul %10, %11, %cst_10 {dimension_numbers = #tpu.dot_dimension_numbers<[1], [0], [0], [1], [0, 0, 1, 1], [], []>} : vector<8x128xbf16>, vector<128x128xbf16>, vector<8x128xf32> -> vector<8x128xf32>
    %c0_11 = arith.constant 0 : index
    %c0_12 = arith.constant 0 : index
    %13 = vector.load %arg6[%c0_11, %c0_12] : memref<1x128xf32, #tpu.memory_space<vmem>>, vector<1x128xf32>
    %14 = vector.broadcast %13 : vector<1x128xf32> to vector<8x128xf32>
    %15 = arith.addf %12, %14 : vector<8x128xf32>
    %cst_13 = arith.constant 0.000000e+00 : f32
    %16 = vector.broadcast %cst_13 : f32 to vector<8x128xf32>
    %17 = arith.maximumf %15, %16 : vector<8x128xf32>
    %18 = arith.truncf %9 : vector<8x128xf32> to vector<8x128xbf16>
    %19 = arith.truncf %17 : vector<8x128xf32> to vector<8x128xbf16>
    %c0_14 = arith.constant 0 : index
    %c0_15 = arith.constant 0 : index
    %20 = vector.load %arg7[%c0_14, %c0_15] : memref<128x512xbf16, #tpu.memory_space<vmem>>, vector<128x512xbf16>
    %cst_16 = arith.constant dense<0.000000e+00> : vector<8x512xf32>
    %21 = tpu.matmul %18, %20, %cst_16 {dimension_numbers = #tpu.dot_dimension_numbers<[1], [0], [0], [1], [0, 0, 1, 1], [], []>} : vector<8x128xbf16>, vector<128x512xbf16>, vector<8x512xf32> -> vector<8x512xf32>
    %c0_17 = arith.constant 0 : index
    %c0_18 = arith.constant 0 : index
    %22 = vector.load %arg8[%c0_17, %c0_18] : memref<128x512xbf16, #tpu.memory_space<vmem>>, vector<128x512xbf16>
    %cst_19 = arith.constant dense<0.000000e+00> : vector<8x512xf32>
    %23 = tpu.matmul %19, %22, %cst_19 {dimension_numbers = #tpu.dot_dimension_numbers<[1], [0], [0], [1], [0, 0, 1, 1], [], []>} : vector<8x128xbf16>, vector<128x512xbf16>, vector<8x512xf32> -> vector<8x512xf32>
    %24 = arith.addf %21, %23 : vector<8x512xf32>
    %c0_20 = arith.constant 0 : index
    %c0_21 = arith.constant 0 : index
    %25 = vector.load %arg9[%c0_20, %c0_21] : memref<1x512xf32, #tpu.memory_space<vmem>>, vector<1x512xf32>
    %26 = vector.broadcast %25 : vector<1x512xf32> to vector<8x512xf32>
    %27 = arith.addf %24, %26 : vector<8x512xf32>
    %28 = vector.extract_strided_slice %27 {offsets = [0, 0], sizes = [8, 256], strides = [1, 1]} : vector<8x512xf32> to vector<8x256xf32>
    %cst_22 = arith.constant 0.000000e+00 : f32
    %29 = vector.broadcast %cst_22 : f32 to vector<8x256xf32>
    %30 = arith.maximumf %28, %29 : vector<8x256xf32>
    %31 = vector.extract_strided_slice %27 {offsets = [0, 256], sizes = [8, 256], strides = [1, 1]} : vector<8x512xf32> to vector<8x256xf32>
    %cst_23 = arith.constant 0.000000e+00 : f32
    %32 = vector.broadcast %cst_23 : f32 to vector<8x256xf32>
    %33 = arith.maximumf %31, %32 : vector<8x256xf32>
    %c0_24 = arith.constant 0 : index
    %c0_25 = arith.constant 0 : index
    %34 = vector.load %arg10[%c0_24, %c0_25] : memref<1x256xf32, #tpu.memory_space<vmem>>, vector<1x256xf32>
    %35 = vector.broadcast %34 : vector<1x256xf32> to vector<8x256xf32>
    %36 = arith.mulf %33, %35 : vector<8x256xf32>
    %cst_26 = arith.constant dense<0.000000e+00> : vector<8xf32>
    %37 = vector.multi_reduction <add>, %36, %cst_26 [1] : vector<8x256xf32> to vector<8xf32>
    %38 = vector.shape_cast %37 : vector<8xf32> to vector<8x1xf32>
    %c0_27 = arith.constant 0 : index
    %c0_28 = arith.constant 0 : index
    %39 = memref.load %arg11[%c0_27, %c0_28] : memref<1x1xf32, #tpu.memory_space<smem>>
    %40 = vector.broadcast %39 : f32 to vector<8x1xf32>
    %41 = arith.addf %38, %40 : vector<8x1xf32>
    %42 = arith.negf %41 : vector<8x1xf32>
    %43 = math.exp %42 : vector<8x1xf32>
    %cst_29 = arith.constant 1.000000e+00 : f32
    %44 = vector.broadcast %cst_29 : f32 to vector<8x1xf32>
    %45 = arith.addf %44, %43 : vector<8x1xf32>
    %46 = arith.divf %44, %45 : vector<8x1xf32>
    %47 = arith.truncf %30 : vector<8x256xf32> to vector<8x256xbf16>
    %c0_30 = arith.constant 0 : index
    %c0_31 = arith.constant 0 : index
    %48 = vector.load %arg12[%c0_30, %c0_31] : memref<256x128xbf16, #tpu.memory_space<vmem>>, vector<256x128xbf16>
    %cst_32 = arith.constant dense<0.000000e+00> : vector<8x128xf32>
    %49 = tpu.matmul %47, %48, %cst_32 {dimension_numbers = #tpu.dot_dimension_numbers<[1], [0], [0], [1], [0, 0, 1, 1], [], []>} : vector<8x256xbf16>, vector<256x128xbf16>, vector<8x128xf32> -> vector<8x128xf32>
    %c0_33 = arith.constant 0 : index
    %c0_34 = arith.constant 0 : index
    %50 = vector.load %arg13[%c0_33, %c0_34] : memref<1x128xf32, #tpu.memory_space<vmem>>, vector<1x128xf32>
    %51 = vector.broadcast %50 : vector<1x128xf32> to vector<8x128xf32>
    %52 = arith.addf %49, %51 : vector<8x128xf32>
    %53 = arith.addf %52, %0 : vector<8x128xf32>
    %54 = arith.subf %1, %0 : vector<8x128xf32>
    %55 = vector.broadcast %46 : vector<8x1xf32> to vector<8x128xf32>
    %56 = arith.mulf %55, %54 : vector<8x128xf32>
    %57 = arith.addf %53, %56 : vector<8x128xf32>
    %58 = arith.mulf %57, %57 : vector<8x128xf32>
    %cst_35 = arith.constant dense<0.000000e+00> : vector<8xf32>
    %59 = vector.multi_reduction <add>, %58, %cst_35 [1] : vector<8x128xf32> to vector<8xf32>
    %60 = vector.shape_cast %59 : vector<8xf32> to vector<8x1xf32>
    %cst_36 = arith.constant 1.000000e-24 : f32
    %61 = vector.broadcast %cst_36 : f32 to vector<8x1xf32>
    %62 = arith.maximumf %60, %61 : vector<8x1xf32>
    %63 = math.rsqrt %62 : vector<8x1xf32>
    %64 = vector.broadcast %63 : vector<8x1xf32> to vector<8x128xf32>
    %65 = arith.mulf %57, %64 : vector<8x128xf32>
    %c0_37 = arith.constant 0 : index
    %c0_38 = arith.constant 0 : index
    %66 = vector.load %arg14[%c0_37, %c0_38] : memref<8x128xf32, #tpu.memory_space<vmem>>, vector<8x128xf32>
    tpu.vector_store %arg14[%c0_37, %c0_38], %65 {strides = array<i32>} : memref<8x128xf32, #tpu.memory_space<vmem>>, vector<8x128xf32>,
    return
  }
  func.func @transform_0(%arg0: i32) -> (i32, i32) {
    %c0_i32 = arith.constant 0 : i32
    %c0_i32_0 = arith.constant 0 : i32
    return %arg0, %c0_i32 : i32, i32
  }
  func.func @transform_1(%arg0: i32) -> (i32, i32) {
    %c0_i32 = arith.constant 0 : i32
    %c0_i32_0 = arith.constant 0 : i32
    return %arg0, %c0_i32 : i32, i32
  }
  func.func @transform_2(%arg0: i32) -> (i32, i32) {
    %c0_i32 = arith.constant 0 : i32
    %c0_i32_0 = arith.constant 0 : i32
    %c0_i32_1 = arith.constant 0 : i32
    return %c0_i32, %c0_i32_0 : i32, i32
  }
  func.func @transform_3(%arg0: i32) -> (i32, i32) {
    %c0_i32 = arith.constant 0 : i32
    %c0_i32_0 = arith.constant 0 : i32
    %c0_i32_1 = arith.constant 0 : i32
    return %c0_i32, %c0_i32_0 : i32, i32
  }
  func.func @transform_4(%arg0: i32) -> (i32, i32) {
    %c0_i32 = arith.constant 0 : i32
    %c0_i32_0 = arith.constant 0 : i32
    %c0_i32_1 = arith.constant 0 : i32
    return %c0_i32, %c0_i32_0 : i32, i32
  }
  func.func @transform_5(%arg0: i32) -> (i32, i32) {
    %c0_i32 = arith.constant 0 : i32
    %c0_i32_0 = arith.constant 0 : i32
    %c0_i32_1 = arith.constant 0 : i32
    return %c0_i32, %c0_i32_0 : i32, i32
  }
  func.func @transform_6(%arg0: i32) -> (i32, i32) {
    %c0_i32 = arith.constant 0 : i32
    %c0_i32_0 = arith.constant 0 : i32
    %c0_i32_1 = arith.constant 0 : i32
    return %c0_i32, %c0_i32_0 : i32, i32
  }
  func.func @transform_7(%arg0: i32) -> (i32, i32) {
    %c0_i32 = arith.constant 0 : i32
    %c0_i32_0 = arith.constant 0 : i32
    %c0_i32_1 = arith.constant 0 : i32
    return %c0_i32, %c0_i32_0 : i32, i32
  }
  func.func @transform_8(%arg0: i32) -> (i32, i32) {
    %c0_i32 = arith.constant 0 : i32
    %c0_i32_0 = arith.constant 0 : i32
    %c0_i32_1 = arith.constant 0 : i32
    return %c0_i32, %c0_i32_0 : i32, i32
  }
  func.func @transform_9(%arg0: i32) -> (i32, i32) {
    %c0_i32 = arith.constant 0 : i32
    %c0_i32_0 = arith.constant 0 : i32
    %c0_i32_1 = arith.constant 0 : i32
    return %c0_i32, %c0_i32_0 : i32, i32
  }
  func.func @transform_10(%arg0: i32) -> (i32, i32) {
    %c0_i32 = arith.constant 0 : i32
    %c0_i32_0 = arith.constant 0 : i32
    %c0_i32_1 = arith.constant 0 : i32
    return %c0_i32, %c0_i32_0 : i32, i32
  }
  func.func @transform_11(%arg0: i32) -> (i32, i32) {
    %c0_i32 = arith.constant 0 : i32
    %c0_i32_0 = arith.constant 0 : i32
    %c0_i32_1 = arith.constant 0 : i32
    return %c0_i32, %c0_i32_0 : i32, i32
  }
  func.func @transform_12(%arg0: i32) -> (i32, i32) {
    %c0_i32 = arith.constant 0 : i32
    %c0_i32_0 = arith.constant 0 : i32
    %c0_i32_1 = arith.constant 0 : i32
    return %c0_i32, %c0_i32_0 : i32, i32
  }
  func.func @transform_13(%arg0: i32) -> (i32, i32) {
    %c0_i32 = arith.constant 0 : i32
    %c0_i32_0 = arith.constant 0 : i32
    return %arg0, %c0_i32 : i32, i32
  }
}

</mosaic_0001>

<bundles_post_ra>
// kernel: tpu_custom_call.1
= control target key start
LH: loop header
LB: loop body
LE: loop exit
PB: predicated region body
PF: predicated region fallthrough
CT: control target
= control target key end

     0   :  { %19 = vsyncpa [#allocation4], 0  ;;  %s1830_s0 = inlined_call_operand.hbm [shape: f32[8,128], index: 0, kind: input, shape index: {}]   ;;  %s1831_s1 = inlined_call_operand.hbm [shape: f32[8,128], index: 1, kind: input, shape index: {}]   ;;  %s1832_s2 = inlined_call_operand.hbm [shape: bf16[128,128], index: 2, kind: input, shape index: {}]   ;;  %s1833_s3 = inlined_call_operand.vmem [shape: f32[1,128], index: 3, kind: input, shape index: {}]   ;;  %s1834_s4 = inlined_call_operand.hbm [shape: bf16[128,128], index: 4, kind: input, shape index: {}]   ;;  %s1835_s5 = inlined_call_operand.vmem [shape: f32[1,128], index: 5, kind: input, shape index: {}]   ;;  %s1836_s6 = inlined_call_operand.hbm [shape: bf16[128,512], index: 6, kind: input, shape index: {}]   ;;  %s1837_s7 = inlined_call_operand.hbm [shape: bf16[128,512], index: 7, kind: input, shape index: {}]   ;;  %s1838_s8 = inlined_call_operand.vmem [shape: f32[1,512], index: 8, kind: input, shape index: {}]   ;;  %s1839_s9 = inlined_call_operand.vmem [shape: f32[1,256], index: 9, kind: input, shape index: {}]   ;;  %s1840_s10 = inlined_call_operand.<no memory space> [shape: f32[1,1], index: 10, kind: input, shape index: {}]   ;;  %s1841_s11 = inlined_call_operand.hbm [shape: bf16[256,128], index: 11, kind: input, shape index: {}]   ;;  %s1842_s12 = inlined_call_operand.vmem [shape: f32[1,128], index: 12, kind: input, shape index: {}]   ;;  %s1843_s13 = inlined_call_operand.hbm [shape: f32[8,128], index: 13, kind: output, shape index: {}]  }
   0x1   :  { %20 = vsyncpa [#allocation7], 0 }
   0x2   :  { %21 = vsyncpa [#allocation10], 0 }
   0x3   :  { %22 = vsyncpa [#allocation13], 0 }
   0x4   :  { %23 = vsyncpa [#allocation5], 0  ;;  %s1677_s25 = smov [#allocation6]  }
   0x5   :  { %s40_s26 = sshll.u32 %s1677_s25, 4  ;;  %s41_s26 = int_to_ptr.vmem [resolvable:$true] %s40_s26 }
   0x6   :  { %s1515_s27 = scalar_lea.vmem %s41_s26, 128  ;;  %p1520_p1 = scmp.lt.s32.totalorder %s41_s26, %s41_s26 }
   0x7   :  { %p1516_p0 = scmp.ne.s32.totalorder %s41_s26, %s1515_s27  ;;  %p1521_p2 = scmp.lt.s32.totalorder %s1515_s27, %s1515_s27 }
   0x9   :  { %p1522_p3 = por %p1521_p2, %p1520_p1 }
   0xb   :  { %p1523_p4 = pnand %p1522_p3, %p1516_p0 }
   0xd   :  { %1526 = shalt.err (!%p1523_p4)
}
   0xe   :  { %43 = dma.hbm_to_vmem [thread:$0]  %s1831_s1, 128, %s41_s26, [#allocation7]  }
   0xf   :  { %s1678_s30 = smov [#allocation9]  }
  0x10   :  { %s63_s14 = sshll.u32 %s1678_s30, 4  ;;  %s64_s14 = int_to_ptr.vmem [resolvable:$true] %s63_s14 }
  0x11   :  { %s1535_s15 = scalar_lea.vmem %s64_s14, 1024  ;;  %p1540_p6 = scmp.lt.s32.totalorder %s64_s14, %s64_s14 }
  0x12   :  { %p1536_p5 = scmp.ne.s32.totalorder %s64_s14, %s1535_s15  ;;  %p1541_p7 = scmp.lt.s32.totalorder %s1535_s15, %s1535_s15 }
  0x14   :  { %p1542_p8 = por %p1541_p7, %p1540_p6 }
  0x16   :  { %p1543_p9 = pnand %p1542_p8, %p1536_p5 }
  0x18   :  { %1546 = shalt.err (!%p1543_p9)
}
  0x19   :  { %s1679_s16 = smov 64   ;;  %s1680_s17 = smov 4  }
  0x1a   :  { %69 = dma.hbm_to_vmem [thread:$0]  %s1834_s4, 1024, %s64_s14, [#allocation10], %s1679_s16, %s1679_s16, %s1680_s17  }
  0x1b   :  { %s1681_s1 = smov [#allocation12]   ;;  %s1682_s21 = smov [#allocation3]  }
  0x1c   :  { %s89_s20 = sshll.u32 %s1681_s1, 4  ;;  %s30_s22 = sshll.u32 %s1682_s21, 4  ;;  %s90_s20 = int_to_ptr.vmem [resolvable:$true] %s89_s20  ;;  %s31_s22 = int_to_ptr.vmem [resolvable:$true] %s30_s22 }
  0x1d   :  { %s1555_s23 = scalar_lea.vmem %s90_s20, 4096  ;;  %p1560_p11 = scmp.lt.s32.totalorder %s90_s20, %s90_s20 }
  0x1e   :  { %p1556_p10 = scmp.ne.s32.totalorder %s90_s20, %s1555_s23  ;;  %p1561_p12 = scmp.lt.s32.totalorder %s1555_s23, %s1555_s23 }
  0x20   :  { %p1562_p13 = por %p1561_p12, %p1560_p11 }
  0x22   :  { %p1563_p0 = pnand %p1562_p13, %p1556_p10 }
  0x24   :  { %1566 = shalt.err (!%p1563_p0)
}
  0x25   :  { %s1683_s24 = smov 256   ;;  %s1684_s25 = smov 16  }
  0x26   :  { %95 = dma.hbm_to_vmem [thread:$0]  %s1837_s7, 4096, %s90_s20, [#allocation13], %s1683_s24, %s1683_s24, %s1684_s25  }
  0x27   :  { %s1575_s27 = scalar_lea.vmem %s31_s22, 128  ;;  %p1580_p2 = scmp.lt.s32.totalorder %s31_s22, %s31_s22 }
  0x28   :  { %p1576_p1 = scmp.ne.s32.totalorder %s31_s22, %s1575_s27  ;;  %p1581_p3 = scmp.lt.s32.totalorder %s1575_s27, %s1575_s27 }
  0x2a   :  { %p1582_p4 = por %p1581_p3, %p1580_p2 }
  0x2c   :  { %p1583_p5 = pnand %p1582_p4, %p1576_p1 }
  0x2e   :  { %1586 = shalt.err (!%p1583_p5)
}
  0x2f   :  { %33 = dma.hbm_to_vmem [thread:$0]  %s1830_s0, 128, %s31_s22, [#allocation4]  }
  0x30   :  { %s1685_s30 = smov [#allocation8]   ;;  %s1686_s15 = smov [#allocation11]  }
  0x31   :  { %s49_s14 = sshll.u32 %s1685_s30, 4  ;;  %s77_s18 = sshll.u32 %s1686_s15, 4  ;;  %s50_s14 = int_to_ptr.vmem [resolvable:$true] %s49_s14  ;;  %s78_s18 = int_to_ptr.vmem [resolvable:$true] %s77_s18 }
  0x32   :  { %s1595_s19 = scalar_lea.vmem %s50_s14, 1024  ;;  %p1600_p7 = scmp.lt.s32.totalorder %s50_s14, %s50_s14 }
  0x33   :  { %p1596_p6 = scmp.ne.s32.totalorder %s50_s14, %s1595_s19  ;;  %p1601_p8 = scmp.lt.s32.totalorder %s1595_s19, %s1595_s19 }
  0x35   :  { %p1602_p9 = por %p1601_p8, %p1600_p7 }
  0x37   :  { %p1603_p10 = pnand %p1602_p9, %p1596_p6 }
  0x39   :  { %1606 = shalt.err (!%p1603_p10)
}
  0x3a   :  { %55 = dma.hbm_to_vmem [thread:$0]  %s1832_s2, 1024, %s50_s14, [#allocation7], %s1679_s16, %s1679_s16, %s1680_s17  }
  0x3b   :  { %s1615_s0 = scalar_lea.vmem %s78_s18, 4096  ;;  %p1620_p12 = scmp.lt.s32.totalorder %s78_s18, %s78_s18 }
  0x3c   :  { %p1616_p11 = scmp.ne.s32.totalorder %s78_s18, %s1615_s0  ;;  %p1621_p13 = scmp.lt.s32.totalorder %s1615_s0, %s1615_s0 }
  0x3e   :  { %p1622_p0 = por %p1621_p13, %p1620_p12 }
  0x40   :  { %p1623_p1 = pnand %p1622_p0, %p1616_p11 }
  0x42   :  { %1626 = shalt.err (!%p1623_p1)
}
  0x43   :  { %83 = dma.hbm_to_vmem [thread:$0]  %s1836_s6, 4096, %s78_s18, [#allocation10], %s1683_s24, %s1683_s24, %s1684_s25  }
  0x44   :  { %s1687_s22 = smov [#allocation14]  }
  0x45   :  { %s107_s23 = sshll.u32 %s1687_s22, 4  ;;  %s108_s23 = int_to_ptr.vmem [resolvable:$true] %s107_s23 }
  0x46   :  { %s1635_s26 = scalar_lea.vmem %s108_s23, 2048  ;;  %p1640_p3 = scmp.lt.s32.totalorder %s108_s23, %s108_s23 }
  0x47   :  { %p1636_p2 = scmp.ne.s32.totalorder %s108_s23, %s1635_s26  ;;  %p1641_p4 = scmp.lt.s32.totalorder %s1635_s26, %s1635_s26 }
  0x49   :  { %p1642_p5 = por %p1641_p4, %p1640_p3 }
  0x4b   :  { %p1643_p6 = pnand %p1642_p5, %p1636_p2 }
  0x4d   :  { %1646 = shalt.err (!%p1643_p6)
}
  0x4e   :  { %113 = dma.hbm_to_vmem [thread:$0]  %s1841_s11, 2048, %s108_s23, [#allocation13], %s1679_s16, %s1679_s16, %s1680_s17  }
  0x4f   :  { %1667 = dma.done.wait [#allocation4], 128  }
  0x50   :  { %1668 = vsyncadd [#allocation4], 4294967168 }
  0x51   :  { %1669 = dma.done.wait [#allocation7], 1152  }
  0x52   :  { %1670 = vsyncadd [#allocation7], 4294966144 }
  0x53   :  { %1671 = dma.done.wait [#allocation10], 5120  }
  0x54   :  { %1672 = vsyncadd [#allocation10], 4294962176 }
  0x55   :  { %1673 = dma.done.wait [#allocation13], 6144  }
  0x56   :  { %1674 = vsyncadd [#allocation13], 4294961152  ;;  %v1688_v0 = vmov 0.0   ;;  %vm1689_vm0 = vmmov 0   ;;  %v1373_v1 = vld [vmem:[#allocation9 + $0x38] sm:$0xff]   ;;  %v1374_v2 = vld [vmem:[#allocation9 + $0x30] sm:$0xff]  }
  0x57   :  { %1338 = vmatprep.subr.bf16.mxu1 %v1688_v0  ;;  %1318 = vmatprep.subr.bf16.mxu0 %v1688_v0  ;;  %v1375_v3 = vld [vmem:[#allocation9 + $0x28] sm:$0xff]   ;;  %v1380_v4 = vld [vmem:[#allocation8 + $0x38] sm:$0xff]   ;;  %v1382_v5 = vld [vmem:[#allocation8 + $0x30] sm:$0xff]   ;;  %v1690_v55 = vmov 0  }
  0x58   :  { %1354 = vmatprep.mubr.msk.bf16.mxu1 %vm1689_vm0, %v1688_v0  ;;  %1334 = vmatprep.mubr.msk.bf16.mxu0 %vm1689_vm0, %v1688_v0  ;;  %v1376_v6 = vld [vmem:[#allocation9 + $0x20] sm:$0xff]   ;;  %v1383_v7 = vld [vmem:[#allocation8 + $0x28] sm:$0xff]   ;;  %v1377_v8 = vld [vmem:[#allocation9 + $0x18] sm:$0xff]  }
  0x59   :  { %1339 = vmatpush3.bf16.msra.mxu1 %v1373_v1  ;;  %1319 = vmatpush3.bf16.msra.mxu0 %v1380_v4  ;;  %v1384_v9 = vld [vmem:[#allocation8 + $0x20] sm:$0xff]   ;;  %v1378_v10 = vld [vmem:[#allocation9 + $0x10] sm:$0xff]   ;;  %v1385_v11 = vld [vmem:[#allocation8 + $0x18] sm:$0xff]  }
  0x5a   :  { %1340 = vmatprep.subr.bf16.mxu1 %v1688_v0  ;;  %1320 = vmatprep.subr.bf16.mxu0 %v1688_v0  ;;  %v1379_v12 = vld [vmem:[#allocation9 + $0x8] sm:$0xff]   ;;  %v1381_v13 = vld [vmem:[#allocation9] sm:$0xff]   ;;  %v1386_v14 = vld [vmem:[#allocation8 + $0x10] sm:$0xff]  }
  0x5b   :  { %v1798_v15 = vld [vmem:[#allocation3] sm:$0xff]  ;;  %v1394_v16 = vld [vmem:[#allocation12 + $0xec] ss:$16 sps:$4 sm:$0xff]   ;;  %v1392_v19 = vld [vmem:[#allocation12 + $0xe8] ss:$16 sps:$4 sm:$0xff]  }
  0x5c   :  { %v253_v17 = vpack.c.bf16 %v1798_v15, %v1798_v15  ;;  %v1387_v18 = vld [vmem:[#allocation8 + $0x8] sm:$0xff]   ;;  %v1388_v21 = vld [vmem:[#allocation8] sm:$0xff]   ;;  %v1802_v22 = vld [vmem:[#allocation6] sm:$0xff] }
  0x5d   :  { %1341 = vmatpush3.bf16.msra.mxu1 %v1374_v2  ;;  %1321 = vmatpush3.bf16.msra.mxu0 %v1382_v5  ;;  %v1400_v20 = vld [vmem:[#allocation12 + $0xcc] ss:$16 sps:$4 sm:$0xff]   ;;  %v1391_v23 = vld [vmem:[#allocation12 + $0xe4] ss:$16 sps:$4 sm:$0xff]   ;;  %v1398_v24 = vld [vmem:[#allocation12 + $0xc8] ss:$16 sps:$4 sm:$0xff]   ;;  %v140_v27 = vpack.c.bf16 %v1802_v22, %v1802_v22 }
  0x5e   :  { %1342 = vmatprep.subr.bf16.mxu1 %v1688_v0  ;;  %1322 = vmatprep.subr.bf16.mxu0 %v1688_v0  ;;  %v1389_v25 = vld [vmem:[#allocation12 + $0xe0] ss:$16 sps:$4 sm:$0xff]   ;;  %v1406_v26 = vld [vmem:[#allocation12 + $0xac] ss:$16 sps:$4 sm:$0xff]   ;;  %v1397_v28 = vld [vmem:[#allocation12 + $0xc4] ss:$16 sps:$4 sm:$0xff]  }
  0x5f   :  { %v1404_v29 = vld [vmem:[#allocation12 + $0xa8] ss:$16 sps:$4 sm:$0xff]   ;;  %v1412_v30 = vld [vmem:[#allocation12 + $0x8c] ss:$16 sps:$4 sm:$0xff]   ;;  %v1395_v31 = vld [vmem:[#allocation12 + $0xc0] ss:$16 sps:$4 sm:$0xff]  }
  0x60   :  { %v1403_v32 = vld [vmem:[#allocation12 + $0xa4] ss:$16 sps:$4 sm:$0xff]   ;;  %v1410_v33 = vld [vmem:[#allocation12 + $0x88] ss:$16 sps:$4 sm:$0xff]   ;;  %v1418_v34 = vld [vmem:[#allocation12 + $0x6c] ss:$16 sps:$4 sm:$0xff]  }
  0x61   :  { %1343 = vmatpush3.bf16.msra.mxu1 %v1375_v3  ;;  %1323 = vmatpush3.bf16.msra.mxu0 %v1383_v7  ;;  %v1401_v35 = vld [vmem:[#allocation12 + $0xa0] ss:$16 sps:$4 sm:$0xff]   ;;  %v1409_v36 = vld [vmem:[#allocation12 + $0x84] ss:$16 sps:$4 sm:$0xff]   ;;  %v1416_v37 = vld [vmem:[#allocation12 + $0x68] ss:$16 sps:$4 sm:$0xff]  }
  0x62   :  { %1344 = vmatprep.subr.bf16.mxu1 %v1688_v0  ;;  %1324 = vmatprep.subr.bf16.mxu0 %v1688_v0  ;;  %v1424_v38 = vld [vmem:[#allocation12 + $0x4c] ss:$16 sps:$4 sm:$0xff]   ;;  %v1407_v39 = vld [vmem:[#allocation12 + $0x80] ss:$16 sps:$4 sm:$0xff]   ;;  %v1415_v40 = vld [vmem:[#allocation12 + $0x64] ss:$16 sps:$4 sm:$0xff]  }
  0x63   :  { %v1422_v41 = vld [vmem:[#allocation12 + $0x48] ss:$16 sps:$4 sm:$0xff]   ;;  %v1430_v42 = vld [vmem:[#allocation12 + $0x2c] ss:$16 sps:$4 sm:$0xff]   ;;  %v1413_v43 = vld [vmem:[#allocation12 + $0x60] ss:$16 sps:$4 sm:$0xff]  }
  0x64   :  { %v1421_v44 = vld [vmem:[#allocation12 + $0x44] ss:$16 sps:$4 sm:$0xff]   ;;  %v1428_v45 = vld [vmem:[#allocation12 + $0x28] ss:$16 sps:$4 sm:$0xff]   ;;  %v1419_v46 = vld [vmem:[#allocation12 + $0x40] ss:$16 sps:$4 sm:$0xff]  }
  0x65   :  { %1345 = vmatpush3.bf16.msra.mxu1 %v1376_v6  ;;  %1325 = vmatpush3.bf16.msra.mxu0 %v1384_v9  ;;  %v1427_v47 = vld [vmem:[#allocation12 + $0x24] ss:$16 sps:$4 sm:$0xff]   ;;  %v1425_v48 = vld [vmem:[#allocation12 + $0x20] ss:$16 sps:$4 sm:$0xff]   ;;  %v1436_v50 = vld [vmem:[#allocation12 + $0xc] ss:$16 sps:$4 sm:$0xff]  }
  0x66   :  { %1346 = vmatprep.subr.bf16.mxu1 %v1688_v0  ;;  %1326 = vmatprep.subr.bf16.mxu0 %v1688_v0  ;;  %v1433_v49 = vld [vmem:[#allocation12 + $0x4] ss:$16 sps:$4 sm:$0xff]   ;;  %v1431_v51 = vld [vmem:[#allocation12] ss:$16 sps:$4 sm:$0xff]   ;;  %v1434_v52 = vld [vmem:[#allocation12 + $0x8] ss:$16 sps:$4 sm:$0xff]  }
  0x67   :  { %v1439_v53 = vld [vmem:[#allocation11 + $0xe4] ss:$16 sps:$4 sm:$0xff]   ;;  %v1442_v54 = vld [vmem:[#allocation11 + $0xec] ss:$16 sps:$4 sm:$0xff]   ;;  %v1187_v56 = vld [vmem:[%s1835_s5] ss:$0 sm:$0xff] }
  0x68   :  { %v1437_v62 = vld [vmem:[#allocation11 + $0xe0] ss:$16 sps:$4 sm:$0xff]   ;;  %v1440_v63 = vld [vmem:[#allocation11 + $0xe8] ss:$16 sps:$4 sm:$0xff]   ;;  %v1445_v1 = vld [vmem:[#allocation11 + $0xc4] ss:$16 sps:$4 sm:$0xff]  }
  0x69   :  { %1347 = vmatpush3.bf16.msra.mxu1 %v1377_v8  ;;  %1327 = vmatpush3.bf16.msra.mxu0 %v1385_v11  ;;  %v1448_v2 = vld [vmem:[#allocation11 + $0xcc] ss:$16 sps:$4 sm:$0xff]   ;;  %v1443_v5 = vld [vmem:[#allocation11 + $0xc0] ss:$16 sps:$4 sm:$0xff]   ;;  %v1446_v6 = vld [vmem:[#allocation11 + $0xc8] ss:$16 sps:$4 sm:$0xff]  }
  0x6a   :  { %1348 = vmatprep.subr.bf16.mxu1 %v1688_v0  ;;  %1328 = vmatprep.subr.bf16.mxu0 %v1688_v0  ;;  %v1451_v7 = vld [vmem:[#allocation11 + $0xa4] ss:$16 sps:$4 sm:$0xff]   ;;  %v1454_v8 = vld [vmem:[#allocation11 + $0xac] ss:$16 sps:$4 sm:$0xff]   ;;  %v1449_v11 = vld [vmem:[#allocation11 + $0xa0] ss:$16 sps:$4 sm:$0xff]  }
  0x6d   :  { %1349 = vmatpush3.bf16.msra.mxu1 %v1378_v10  ;;  %1329 = vmatpush3.bf16.msra.mxu0 %v1386_v14  ;;  %v1460_v14 = vld [vmem:[#allocation11 + $0x8c] ss:$16 sps:$4 sm:$0xff]  }
  0x6e   :  { %1350 = vmatprep.subr.bf16.mxu1 %v1688_v0  ;;  %1330 = vmatprep.subr.bf16.mxu0 %v1688_v0 }
  0x71   :  { %1351 = vmatpush3.bf16.msra.mxu1 %v1379_v12  ;;  %1331 = vmatpush3.bf16.msra.mxu0 %v1387_v18  ;;  %v1452_v12 = vld [vmem:[#allocation11 + $0xa8] ss:$16 sps:$4 sm:$0xff]  }
  0x72   :  { %1352 = vmatprep.subr.bf16.mxu1 %v1688_v0  ;;  %1332 = vmatprep.subr.bf16.mxu0 %v1688_v0  ;;  %v1458_v18 = vld [vmem:[#allocation11 + $0x88] ss:$16 sps:$4 sm:$0xff]  }
  0x75   :  { %1353 = vmatpush3.bf16.msra.mxu1 %v1381_v13  ;;  %1333 = vmatpush3.bf16.msra.mxu0 %v1388_v21  ;;  %v1457_v13 = vld [vmem:[#allocation11 + $0x84] ss:$16 sps:$4 sm:$0xff]   ;;  %v1461_v21 = vld [vmem:[#allocation11 + $0x60] ss:$16 sps:$4 sm:$0xff]  }
  0x76   :  { %633 = vmatprep.subr.bf16.mxu1 %v1394_v16  ;;  %592 = vmatprep.subr.bf16.mxu0 %v1391_v23  ;;  %v1464_v23 = vld [vmem:[#allocation11 + $0x68] ss:$16 sps:$4 sm:$0xff]  }
  0x78   :  { %1355 = vmatmul.mubr.bf16.vlgmr.msra.gmra.mxu1 %v253_v17  ;;  %1335 = vmatmul.mubr.bf16.vlgmr.msra.gmra.mxu0 %v140_v27  ;;  %v1455_v17 = vld [vmem:[#allocation11 + $0x80] ss:$16 sps:$4 sm:$0xff]  }
  0x79   :  { %634 = vmatpush1.bf16.msra.mxu1 %v1392_v19  ;;  %593 = vmatpush1.bf16.msra.mxu0 %v1389_v25  ;;  %v1463_v19 = vld [vmem:[#allocation11 + $0x64] ss:$16 sps:$4 sm:$0xff]   ;;  %v1472_v25 = vld [vmem:[#allocation11 + $0x4c] ss:$16 sps:$4 sm:$0xff]   ;;  %v1467_v27 = vld [vmem:[#allocation11 + $0x40] ss:$16 sps:$4 sm:$0xff]  }
  0x7a   :  { %635 = vmatprep.subr.bf16.mxu1 %v1400_v20  ;;  %594 = vmatprep.subr.bf16.mxu0 %v1397_v28  ;;  %v1466_v20 = vld [vmem:[#allocation11 + $0x6c] ss:$16 sps:$4 sm:$0xff]   ;;  %v1470_v28 = vld [vmem:[#allocation11 + $0x48] ss:$16 sps:$4 sm:$0xff]  }
  0x7b   :  { %624 = vmatprep.mubr.bf16.mxu0 %v1690_v55  ;;  %665 = vmatprep.mubr.bf16.mxu1 %v1690_v55 }
  0x7d   :  { %636 = vmatpush1.bf16.msra.mxu1 %v1398_v24  ;;  %595 = vmatpush1.bf16.msra.mxu0 %v1395_v31  ;;  %v1469_v24 = vld [vmem:[#allocation11 + $0x44] ss:$16 sps:$4 sm:$0xff]  }
  0x7e   :  { %637 = vmatprep.subr.bf16.mxu1 %v1406_v26  ;;  %596 = vmatprep.subr.bf16.mxu0 %v1403_v32  ;;  %v1178_v26 = vld [vmem:[%s1833_s3] ss:$0 sm:$0xff] }
  0x7f   :  { %v1473_v32 = vld [vmem:[#allocation11 + $0x20] ss:$16 sps:$4 sm:$0xff]  }
  0x81   :  { %638 = vmatpush1.bf16.msra.mxu1 %v1404_v29  ;;  %597 = vmatpush1.bf16.msra.mxu0 %v1401_v35  ;;  %v1475_v29 = vld [vmem:[#allocation11 + $0x24] ss:$16 sps:$4 sm:$0xff]   ;;  %v1484_v35 = vld [vmem:[#allocation11 + $0xc] ss:$16 sps:$4 sm:$0xff]  }
  0x82   :  { %639 = vmatprep.subr.bf16.mxu1 %v1412_v30  ;;  %598 = vmatprep.subr.bf16.mxu0 %v1409_v36  ;;  %v1478_v30 = vld [vmem:[#allocation11 + $0x2c] ss:$16 sps:$4 sm:$0xff]  }
  0x85   :  { %640 = vmatpush1.bf16.msra.mxu1 %v1410_v33  ;;  %599 = vmatpush1.bf16.msra.mxu0 %v1407_v39  ;;  %v1476_v33 = vld [vmem:[#allocation11 + $0x28] ss:$16 sps:$4 sm:$0xff]  }
  0x86   :  { %641 = vmatprep.subr.bf16.mxu1 %v1418_v34  ;;  %600 = vmatprep.subr.bf16.mxu0 %v1415_v40  ;;  %v1481_v34 = vld [vmem:[#allocation11 + $0x4] ss:$16 sps:$4 sm:$0xff]   ;;  %v1485_v40 = vld [vmem:[#allocation14 + $0x78] sm:$0xff]  }
  0x89   :  { %642 = vmatpush1.bf16.msra.mxu1 %v1416_v37  ;;  %601 = vmatpush1.bf16.msra.mxu0 %v1413_v43  ;;  %v1479_v37 = vld [vmem:[#allocation11] ss:$16 sps:$4 sm:$0xff]  }
  0x8a   :  { %643 = vmatprep.subr.bf16.mxu1 %v1424_v38  ;;  %602 = vmatprep.subr.bf16.mxu0 %v1421_v44  ;;  %v1482_v38 = vld [vmem:[#allocation11 + $0x8] ss:$16 sps:$4 sm:$0xff]   ;;  %v1488_v43 = vld [vmem:[#allocation14 + $0x30] sm:$0xff]  }
  0x8b   :  { %v1489_v44 = vld [vmem:[#allocation14 + $0x68] sm:$0xff]  }
  0x8d   :  { %644 = vmatpush1.bf16.msra.mxu1 %v1422_v41  ;;  %603 = vmatpush1.bf16.msra.mxu0 %v1419_v46  ;;  %v1486_v41 = vld [vmem:[#allocation14 + $0x38] sm:$0xff]   ;;  %v1491_v46 = vld [vmem:[#allocation14 + $0x60] sm:$0xff]  }
  0x8e   :  { %645 = vmatprep.subr.bf16.mxu1 %v1430_v42  ;;  %604 = vmatprep.subr.bf16.mxu0 %v1427_v47  ;;  %v1487_v42 = vld [vmem:[#allocation14 + $0x70] sm:$0xff]   ;;  %v1492_v47 = vld [vmem:[#allocation14 + $0x20] sm:$0xff]  }
  0x91   :  { %646 = vmatpush1.bf16.msra.mxu1 %v1428_v45  ;;  %605 = vmatpush1.bf16.msra.mxu0 %v1425_v48  ;;  %v1490_v45 = vld [vmem:[#allocation14 + $0x28] sm:$0xff]   ;;  %v1493_v48 = vld [vmem:[#allocation14 + $0x58] sm:$0xff]  }
  0x92   :  { %606 = vmatprep.subr.bf16.mxu0 %v1433_v49  ;;  %647 = vmatprep.subr.bf16.mxu1 %v1436_v50  ;;  %v1494_v49 = vld [vmem:[#allocation14 + $0x18] sm:$0xff]   ;;  %v1495_v50 = vld [vmem:[#allocation14 + $0x50] sm:$0xff]  }
  0x95   :  { %607 = vmatpush1.bf16.msra.mxu0 %v1431_v51  ;;  %648 = vmatpush1.bf16.msra.mxu1 %v1434_v52  ;;  %v1496_v51 = vld [vmem:[#allocation14 + $0x10] sm:$0xff]   ;;  %v1497_v52 = vld [vmem:[#allocation14 + $0x48] sm:$0xff]  }
  0x96   :  { %834 = vmatprep.subr.bf16.mxu0 %v1439_v53  ;;  %875 = vmatprep.subr.bf16.mxu1 %v1442_v54  ;;  %v1498_v53 = vld [vmem:[#allocation14 + $0x8] sm:$0xff]   ;;  %v1499_v54 = vld [vmem:[#allocation14 + $0x40] sm:$0xff]  }
 0x138   :  { %v359_v57 = vpop.f32.mrf.mxu1  ;;  %v246_v4 = vpop.f32.mrf.mxu0 }
 0x139   :  { %v360_v58 = vadd.f32 %v1187_v56, %v359_v57  ;;  %v247_v31 = vadd.f32 %v1178_v26, %v246_v4  ;;  %v916_v4 = vld [vmem:[%s1838_s8] sm:$0xf] }
 0x13a   :  { %v1356_v59 = vpop.f32.mrf.mxu1  ;;  %v1336_v9 = vpop.f32.mrf.mxu0 }
 0x13b   :  { %v365_v60 = vmax.f32 %v360_v58, 0.0  ;;  %v252_v36 = vmax.f32 %v247_v31, 0.0 }
 0x13c   :  { %v362_v61 = vpop.f32.mrf.mxu1  ;;  %v249_v10 = vpop.f32.mrf.mxu0 }
 0x13d   :  { %v367_v0 = vpack.c.bf16 %v365_v60, %v365_v60  ;;  %v366_v39 = vpack.c.bf16 %v252_v36, %v252_v36 }
 0x13e   :  { %v1357_v3 = vpop.f32.mrf.mxu1  ;;  %v1337_v16 = vpop.f32.mrf.mxu0 }
 0x13f   :  { %625 = vmatmul.mubr.bf16.vlgmr.msra.gmra.mxu0 %v367_v0  ;;  %666 = vmatmul.mubr.bf16.vlgmr.msra.gmra.mxu1 %v367_v0  ;;  %v918_v0 = vlaneseq  ;;  %v946_v16 = vld [vmem:[%s1839_s9] sm:$0x3] }
 0x140   :  { %835 = vmatpush1.bf16.msra.mxu0 %v1437_v62  ;;  %876 = vmatpush1.bf16.msra.mxu1 %v1440_v63 }
 0x141   :  { %836 = vmatprep.subr.bf16.mxu0 %v1445_v1  ;;  %877 = vmatprep.subr.bf16.mxu1 %v1448_v2  ;;  %v919_v1 = vshrl.u32 %v918_v0, 7 }
 0x142   :  { %866 = vmatprep.mubr.bf16.mxu0 %v1690_v55  ;;  %907 = vmatprep.mubr.bf16.mxu1 %v1690_v55  ;;  %v1500_v55 = vld [vmem:[#allocation14] sm:$0xff]  }
 0x143   :  { %v920_v2 = vsub.s32 0, %v919_v1  ;;  %v928_v3 = vsub.s32 2, %v919_v1 }
 0x144   :  { %837 = vmatpush1.bf16.msra.mxu0 %v1443_v5  ;;  %878 = vmatpush1.bf16.msra.mxu1 %v1446_v6  ;;  %v924_v5 = vsub.s32 1, %v919_v1  ;;  %v932_v6 = vsub.s32 3, %v919_v1 }
 0x145   :  { %838 = vmatprep.subr.bf16.mxu0 %v1451_v7  ;;  %879 = vmatprep.subr.bf16.mxu1 %v1454_v8  ;;  %v921_v7 = vrot.slane %v916_v4, %v920_v2  ;;  %v929_v8 = vrot.slane %v916_v4, %v928_v3  ;;  %v951_v26 = vrot.slane %v946_v16, %v920_v2 }
 0x148   :  { %839 = vmatpush1.bf16.msra.mxu0 %v1449_v11  ;;  %880 = vmatpush1.bf16.msra.mxu1 %v1452_v12 }
 0x149   :  { %840 = vmatprep.subr.bf16.mxu0 %v1457_v13  ;;  %881 = vmatprep.subr.bf16.mxu1 %v1460_v14  ;;  %v925_v13 = vrot.slane %v916_v4, %v924_v5  ;;  %v933_v14 = vrot.slane %v916_v4, %v932_v6 }
 0x14c   :  { %841 = vmatpush1.bf16.msra.mxu0 %v1455_v17  ;;  %882 = vmatpush1.bf16.msra.mxu1 %v1458_v18 }
 0x14d   :  { %842 = vmatprep.subr.bf16.mxu0 %v1463_v19  ;;  %883 = vmatprep.subr.bf16.mxu1 %v1466_v20 }
 0x150   :  { %843 = vmatpush1.bf16.msra.mxu0 %v1461_v21  ;;  %884 = vmatpush1.bf16.msra.mxu1 %v1464_v23 }
 0x151   :  { %844 = vmatprep.subr.bf16.mxu0 %v1469_v24  ;;  %885 = vmatprep.subr.bf16.mxu1 %v1472_v25 }
 0x154   :  { %845 = vmatpush1.bf16.msra.mxu0 %v1467_v27  ;;  %886 = vmatpush1.bf16.msra.mxu1 %v1470_v28 }
 0x155   :  { %846 = vmatprep.subr.bf16.mxu0 %v1475_v29  ;;  %887 = vmatprep.subr.bf16.mxu1 %v1478_v30  ;;  %v955_v30 = vrot.slane %v946_v16, %v924_v5 }
 0x158   :  { %847 = vmatpush1.bf16.msra.mxu0 %v1473_v32  ;;  %888 = vmatpush1.bf16.msra.mxu1 %v1476_v33 }
 0x159   :  { %848 = vmatprep.subr.bf16.mxu0 %v1481_v34  ;;  %889 = vmatprep.subr.bf16.mxu1 %v1484_v35 }
 0x15c   :  { %849 = vmatpush1.bf16.msra.mxu0 %v1479_v37  ;;  %890 = vmatpush1.bf16.msra.mxu1 %v1482_v38 }
 0x15d   :  { %1296 = vmatprep.subr.bf16.mxu0 %v1485_v40 }
 0x15f   :  { %867 = vmatmul.mubr.bf16.vlgmr.msra.gmra.mxu0 %v366_v39  ;;  %908 = vmatmul.mubr.bf16.vlgmr.msra.gmra.mxu1 %v366_v39 }
 0x160   :  { %1297 = vmatpush3.bf16.msra.mxu0 %v1486_v41  ;;  %v964_v41 = vstv %s1840_s10  ;;  %s1691_s10 = smov [#allocation15]  }
 0x161   :  { %1298 = vmatprep.subr.bf16.mxu0 %v1487_v42 }
 0x164   :  { %1299 = vmatpush3.bf16.msra.mxu0 %v1488_v43 }
 0x165   :  { %1300 = vmatprep.subr.bf16.mxu0 %v1489_v44 }
 0x168   :  { %1301 = vmatpush3.bf16.msra.mxu0 %v1490_v45 }
 0x169   :  { %1302 = vmatprep.subr.bf16.mxu0 %v1491_v46 }
 0x16c   :  { %1303 = vmatpush3.bf16.msra.mxu0 %v1492_v47 }
 0x16d   :  { %1304 = vmatprep.subr.bf16.mxu0 %v1493_v48  ;;  %v1261_v48 = vld [vmem:[%s1842_s12] ss:$0 sm:$0xff]  ;;  %s1166_s12 = sshll.u32 %s1691_s10, 4  ;;  %s1167_s12 = int_to_ptr.vmem [resolvable:$true] %s1166_s12 }
 0x16e   :  { %s1647_s29 = scalar_lea.vmem %s1167_s12, 128  ;;  %p1652_p8 = scmp.lt.s32.totalorder %s1167_s12, %s1167_s12 }
 0x16f   :  { %p1648_p7 = scmp.ne.s32.totalorder %s1167_s12, %s1647_s29  ;;  %p1653_p9 = scmp.lt.s32.totalorder %s1647_s29, %s1647_s29 }
 0x170   :  { %1305 = vmatpush3.bf16.msra.mxu0 %v1494_v49 }
 0x171   :  { %1306 = vmatprep.subr.bf16.mxu0 %v1495_v50  ;;  %v1150_v50 = vsub.f32 %v1802_v22, %v1798_v15  ;;  %p1654_p10 = por %p1653_p9, %p1652_p8 }
 0x173   :  { %p1655_p11 = pnand %p1654_p10, %p1648_p7 }
 0x174   :  { %1307 = vmatpush3.bf16.msra.mxu0 %v1496_v51 }
 0x175   :  { %1308 = vmatprep.subr.bf16.mxu0 %v1497_v52 }
 0x178   :  { %1309 = vmatpush3.bf16.msra.mxu0 %v1498_v53 }
 0x179   :  { %1310 = vmatprep.subr.bf16.mxu0 %v1499_v54 }
 0x17c   :  { %1311 = vmatpush3.bf16.msra.mxu0 %v1500_v55 }
 0x1ff   :  { %v626_v56 = vpop.f32.mrf.mxu0  ;;  %v667_v57 = vpop.f32.mrf.mxu1 }
 0x201   :  { %v628_v58 = vpop.f32.mrf.mxu0  ;;  %v669_v59 = vpop.f32.mrf.mxu1 }
 0x203   :  { %v630_v60 = vpop.f32.mrf.mxu0  ;;  %v671_v61 = vpop.f32.mrf.mxu1 }
 0x205   :  { %v631_v62 = vpop.f32.mrf.mxu0  ;;  %v672_v63 = vpop.f32.mrf.mxu1 }
 0x21f   :  { %v868_v9 = vpop.f32.mrf.mxu0  ;;  %v909_v10 = vpop.f32.mrf.mxu1 }
 0x220   :  { %v869_v11 = vadd.f32 %v868_v9, %v626_v56  ;;  %v910_v12 = vadd.f32 %v909_v10, %v667_v57 }
 0x221   :  { %v870_v17 = vpop.f32.mrf.mxu0  ;;  %v911_v18 = vpop.f32.mrf.mxu1 }
 0x222   :  { %v938_v19 = vadd.f32 %v921_v7, %v869_v11  ;;  %v940_v20 = vadd.f32 %v929_v8, %v910_v12  ;;  %v871_v21 = vadd.f32 %v870_v17, %v628_v58  ;;  %v912_v23 = vadd.f32 %v911_v18, %v669_v59 }
 0x223   :  { %v872_v24 = vpop.f32.mrf.mxu0  ;;  %v913_v25 = vpop.f32.mrf.mxu1 }
 0x224   :  { %v944_v27 = vmax.f32 %v940_v20, 0.0  ;;  %v939_v28 = vadd.f32 %v925_v13, %v871_v21  ;;  %v941_v29 = vadd.f32 %v933_v14, %v912_v23  ;;  %v942_v31 = vmax.f32 %v938_v19, 0.0 }
 0x225   :  { %v873_v32 = vpop.f32.mrf.mxu0  ;;  %v914_v33 = vpop.f32.mrf.mxu1 }
 0x226   :  { %v943_v34 = vmax.f32 %v939_v28, 0.0  ;;  %v945_v35 = vmax.f32 %v941_v29, 0.0  ;;  %v958_v37 = vmul.f32 %v951_v26, %v944_v27  ;;  %v972_v39 = vpack.c.bf16 %v942_v31, %v942_v31 }
 0x228   :  { %v973_v36 = vpack.c.bf16 %v943_v34, %v943_v34  ;;  %v959_v38 = vmul.f32 %v955_v30, %v945_v35 }
 0x22a   :  { %1141 = vmatprep.mubr.bf16.mxu0 %v973_v36  ;;  %v960_v40 = vadd.f32 %v959_v38, %v958_v37 }
 0x22b   :  { %1142 = vmatmul.mubr.bf16.vlgmr.msra.gmra.mxu0 %v972_v39 }
 0x22c   :  { %961 = vadd.xlane.f32.xlu0 %v960_v40 }
 0x2b5   :  { %v962_v42 = vpop.xlane.xlu0 %961 }
 0x2b6   :  { %v965_v43 = vadd.f32 %v964_v41, %v962_v42 }
 0x2b8   :  { %v1260_v44 = vmul.f32 -1.442695, %v965_v43 }
 0x2ba   :  { %1501 = vpow2.f32 %v1260_v44 }
 0x2c7   :  { %v1502_v45 = vpop.eup %1501 }
 0x2c8   :  { %v969_v46 = vadd.f32 1.0, %v1502_v45 }
 0x2ca   :  { %1503 = vrcp.f32 %v969_v46 }
 0x2d7   :  { %v1504_v52 = vpop.eup %1503 }
 0x2d8   :  { %v1151_v57 = vmul.f32 %v1504_v52, %v1150_v50 }
 0x2eb   :  { %v1312_v47 = vpop.f32.mrf.mxu0 }
 0x2ed   :  { %v1313_v49 = vpop.f32.mrf.mxu0 }
 0x2ee   :  { %v1314_v51 = vadd.f32 %v1313_v49, %v1312_v47 }
 0x2ef   :  { %v1315_v53 = vpop.f32.mrf.mxu0 }
 0x2f0   :  { %v1144_v54 = vadd.f32 %v1314_v51, %v1261_v48 }
 0x2f1   :  { %v1316_v55 = vpop.f32.mrf.mxu0 }
 0x2f2   :  { %v1149_v56 = vadd.f32 %v1144_v54, %v1798_v15 }
 0x2f4   :  { %v1152_v58 = vadd.f32 %v1151_v57, %v1149_v56 }
 0x2f6   :  { %v1153_v59 = vmul.f32 %v1152_v58, %v1152_v58 }
 0x2f8   :  { %1154 = vadd.xlane.f32.xlu0 %v1153_v59 }
 0x381   :  { %v1155_v60 = vpop.xlane.xlu0 %1154 }
 0x382   :  { %v1156_v61 = vmax.f32 %v1155_v60, 1e-24 }
 0x384   :  { %1505 = vrsqrt.f32 %v1156_v61 }
 0x391   :  { %v1506_v62 = vpop.eup %1505 }
 0x392   :  { %v1158_v63 = vmul.f32 %v1506_v62, %v1152_v58 }
 0x394   :  { %1159 = vst [vmem:[#allocation15] sm:$0xff] %v1158_v63 }
 0x395   :  { %1658 = shalt.err (!%p1655_p11)
}
 0x396   :  { %1169 = dma.vmem_to_hbm [thread:$0]  %s1167_s12, 128, %s1843_s13, [#allocation5]  }
 0x397   :  { %1675 = dma.done.wait [#allocation5], 128  }
 0x398   :  { %1676 = vsyncadd [#allocation5], 4294967168 }
 0x399   :  { %1173 = vsyncpa [#allocation4], 1 }
 0x39a   :  { %1174 = vsyncpa [#allocation7], 1 }
 0x39b   :  { %1175 = vsyncpa [#allocation10], 1 }
 0x39c   :  { %1176 = vsyncpa [#allocation13], 1 }
 0x39d   :  { %1177 = vsyncpa [#allocation5], 1 }

</bundles_post_ra>
